<compile_context>
chip_gen: v7x
topology: tpu7x:2x2x1
jax: 0.10.0
libtpu: 0.0.40
codegen_flags: <defaults>
</compile_context>

<pallas_src>
import numpy as np
import jax
import jax.numpy as jnp
from jax import lax
from jax.experimental import pallas as pl
from jax.experimental.pallas import tpu as pltpu


def _round_up(x, m):
    return (x + m - 1) // m * m


def _pool_grid(num_embeds):
    """Replicates the (gh, gw) mapping of the PyTorch module."""
    if num_embeds in (1, 2, 3, 5, 7):
        return (num_embeds, 1)
    return {4: (2, 2), 6: (3, 2), 8: (4, 2), 9: (3, 3),
            16: (4, 4), 25: (5, 5), 36: (6, 6)}[num_embeds]


def _adaptive_avg_pool_matrix(H, W, gh, gw):
    """P[p, h*W+w] = 1/count if (h, w) is in adaptive window p, else 0 (PyTorch semantics)."""
    P = np.zeros((gh * gw, H * W), dtype=np.float32)
    for i in range(gh):
        h0 = (i * H) // gh
        h1 = -(-((i + 1) * H) // gh)          # ceil
        for j in range(gw):
            w0 = (j * W) // gw
            w1 = -(-((j + 1) * W) // gw)
            cnt = float((h1 - h0) * (w1 - w0))
            for hh in range(h0, h1):
                for ww in range(w0, w1):
                    P[i * gw + j, hh * W + ww] = 1.0 / cnt
    return P


def _encoder_kernel(x_ref, p_ref, w_ref, b_ref, o_ref):
    # x_ref : (tb, C_pad, HW_pad)   batch tile of features (C on sublanes, HW on lanes)
    # p_ref : (P_pad, HW_pad)       constant adaptive-avg-pool matrix
    # w_ref : (N_pad, C_pad)        Linear weight, PyTorch layout (contracted on dim 1)
    # b_ref : (1, N_pad)            bias row
    # o_ref : (tb, P_pad, N_pad)    output tile
    pool_m = p_ref[...]
    w = w_ref[...]
    bias = b_ref[...]
    for b in range(o_ref.shape[0]):           # tb is small & static
        # adaptive avg pool as matmul: (P_pad, HW) x (C_pad, HW)^T -> (P_pad, C_pad)
        pooled = lax.dot_general(
            pool_m, x_ref[b],
            dimension_numbers=(((1,), (1,)), ((), ())),
            preferred_element_type=jnp.float32)
        # linear: (P_pad, C_pad) x (N_pad, C_pad)^T -> (P_pad, N_pad), fused bias
        y = lax.dot_general(
            pooled, w,
            dimension_numbers=(((1,), (1,)), ((), ())),
            preferred_element_type=jnp.float32)
        o_ref[b] = (y + bias).astype(o_ref.dtype)


def global_visual_feature_encoder(x, weight, bias, *, num_embeds,
                                  pool_type="avg", batch_tile=None):
    """y = Linear(flatten(AdaptiveAvgPool2d(x)).transpose(1, 2))  — matches the PyTorch module.

    x      : (B, img_hidden_sz, H, W) float32
    weight : (hidden_sz, img_hidden_sz)   (nn.Linear layout)
    bias   : (hidden_sz,)
    """
    if pool_type != "avg":
        # TODO(synk): 'max' pool type not implemented in the fused kernel.
        raise NotImplementedError("only img_embed_pool_type='avg' is implemented")

    B, C, H, W = x.shape
    N, Cw = weight.shape
    assert Cw == C and bias.shape == (N,)

    gh, gw = _pool_grid(num_embeds)
    assert gh * gw == num_embeds
    P = num_embeds
    HW = H * W

    # Lane-dense padding (numerically inert: zero rows/cols contribute nothing).
    C_pad = _round_up(C, 128)
    HW_pad = _round_up(HW, 128)
    N_pad = _round_up(N, 128)
    P_pad = _round_up(P, 8)

    pool_np = np.zeros((P_pad, HW_pad), dtype=np.float32)
    pool_np[:P, :HW] = _adaptive_avg_pool_matrix(H, W, gh, gw)
    pool_mat = jnp.asarray(pool_np)

    # --- batch tile under a VMEM budget (v7x-safe), keeping >= 2 grid steps ---
    x_block_bytes = C_pad * HW_pad * 4
    out_block_bytes = P_pad * N_pad * 4
    const_bytes = 2 * (N_pad * C_pad + P_pad * HW_pad + N_pad) * 4
    budget = 24 * 1024 * 1024
    if batch_tile is None:
        tb = max(1, (budget - const_bytes) // (2 * (x_block_bytes + out_block_bytes)))
        tb = int(min(tb, 8))                       # keep the in-kernel unroll small
        if B >= 2:
            tb = min(tb, pl.cdiv(B, 2))            # >= 2 grid steps for v7x's two TCs
        tb = max(1, min(tb, B))
    else:
        tb = int(batch_tile)

    grid_b = pl.cdiv(B, tb)
    B_pad = grid_b * tb

    x3 = x.reshape(B, C, HW)
    x3 = jnp.pad(x3, ((0, B_pad - B), (0, C_pad - C), (0, HW_pad - HW)))
    w_pad = jnp.pad(weight, ((0, N_pad - N), (0, C_pad - C)))      # no runtime transpose
    b_pad = jnp.pad(bias, (0, N_pad - N)).reshape(1, N_pad)

    cost = pl.CostEstimate(
        flops=2 * B * (P * HW * C + P * C * N),
        transcendentals=0,
        bytes_accessed=4 * (B * C * HW + N * C + N + B * P * N),
    )

    out = pl.pallas_call(
        _encoder_kernel,
        out_shape=jax.ShapeDtypeStruct((B_pad, P_pad, N_pad), x.dtype),
        grid_spec=pltpu.PrefetchScalarGridSpec(
            num_scalar_prefetch=0,
            grid=(grid_b,),
            in_specs=[
                pl.BlockSpec((tb, C_pad, HW_pad), lambda i: (i, 0, 0)),   # batch tile of x
                pl.BlockSpec((P_pad, HW_pad), lambda i: (0, 0)),          # pool matrix (resident)
                pl.BlockSpec((N_pad, C_pad), lambda i: (0, 0)),           # weight (resident)
                pl.BlockSpec((1, N_pad), lambda i: (0, 0)),               # bias (resident)
            ],
            out_specs=pl.BlockSpec((tb, P_pad, N_pad), lambda i: (i, 0, 0)),
        ),
        compiler_params=pltpu.CompilerParams(
            dimension_semantics=("parallel",),
            vmem_limit_bytes=64 * 1024 * 1024,
        ),
        cost_estimate=cost,
    )(x3, pool_mat, w_pad, b_pad)

    return out[:B, :P, :N]


if __name__ == "__main__":
    # Small shapes consistent with the module:
    #   batch=2, img_hidden_sz=64, feature map 16x16, hidden_sz=32, global_image_embeds=4 -> pool (2,2)
    batch, img_hidden_sz, H, W = 2, 64, 16, 16
    hidden_sz, num_embeds = 32, 4

    key = jax.random.PRNGKey(0)
    kx, kw, kb = jax.random.split(key, 3)
    x = jax.random.normal(kx, (batch, img_hidden_sz, H, W), dtype=jnp.float32)
    weight = jax.random.normal(kw, (hidden_sz, img_hidden_sz), dtype=jnp.float32) * 0.02
    bias = jax.random.normal(kb, (hidden_sz,), dtype=jnp.float32) * 0.02

    y = global_visual_feature_encoder(x, weight, bias, num_embeds=num_embeds)
    y = jax.block_until_ready(y)

    # Pure-JAX reference: adaptive avg pool (2,2) -> flatten -> transpose -> linear.
    gh, gw = 2, 2
    pooled = x.reshape(batch, img_hidden_sz, gh, H // gh, gw, W // gw).mean(axis=(3, 5))
    pooled = pooled.reshape(batch, img_hidden_sz, gh * gw).transpose(0, 2, 1)
    y_ref = pooled @ weight.T + bias

    assert y.shape == (batch, num_embeds, hidden_sz)
    assert jnp.allclose(y, y_ref, atol=1e-5, rtol=1e-5)

    print("KERNEL_OK")
</pallas_src>

<mosaic_0001>
module attributes {stable_mosaic.version = 11 : i64} {
  func.func @_encoder_kernel(%arg0: i32, %arg1: memref<1x128x256xf32, #tpu.memory_space<vmem>>, %arg2: memref<8x256xf32, #tpu.memory_space<vmem>>, %arg3: memref<128x128xf32, #tpu.memory_space<vmem>>, %arg4: memref<1x128xf32, #tpu.memory_space<vmem>>, %arg5: memref<1x8x128xf32, #tpu.memory_space<vmem>>) attributes {dimension_semantics = [#tpu.dimension_semantics<parallel>], iteration_bounds = array<i64: 2>, scalar_prefetch = 0 : i64, scratch_operands = 0 : i64, tpu.core_type = #tpu.core_type<tc>, window_params = [{transform_indices = @transform_0, window_bounds = array<i64: 1, 128, 256>}, {pipeline_mode = #tpu.pipeline_mode<synchronous>, transform_indices = @transform_1, window_bounds = array<i64: 8, 256>}, {pipeline_mode = #tpu.pipeline_mode<synchronous>, transform_indices = @transform_2, window_bounds = array<i64: 128, 128>}, {pipeline_mode = #tpu.pipeline_mode<synchronous>, transform_indices = @transform_3, window_bounds = array<i64: 1, 128>}, {transform_indices = @transform_4, window_bounds = array<i64: 1, 8, 128>}]} {
    %c0 = arith.constant 0 : index
    %c0_0 = arith.constant 0 : index
    %0 = vector.load %arg2[%c0, %c0_0] : memref<8x256xf32, #tpu.memory_space<vmem>>, vector<8x256xf32>
    %c0_1 = arith.constant 0 : index
    %c0_2 = arith.constant 0 : index
    %1 = vector.load %arg3[%c0_1, %c0_2] : memref<128x128xf32, #tpu.memory_space<vmem>>, vector<128x128xf32>
    %c0_3 = arith.constant 0 : index
    %c0_4 = arith.constant 0 : index
    %2 = vector.load %arg4[%c0_3, %c0_4] : memref<1x128xf32, #tpu.memory_space<vmem>>, vector<1x128xf32>
    %c0_5 = arith.constant 0 : index
    %c0_6 = arith.constant 0 : index
    %c0_7 = arith.constant 0 : index
    %3 = vector.load %arg1[%c0_5, %c0_6, %c0_7] : memref<1x128x256xf32, #tpu.memory_space<vmem>>, vector<1x128x256xf32>
    %4 = vector.shape_cast %3 : vector<1x128x256xf32> to vector<128x256xf32>
    %cst = arith.constant dense<0.000000e+00> : vector<8x128xf32>
    %5 = tpu.matmul %0, %4, %cst {dimension_numbers = #tpu.dot_dimension_numbers<[1], [1], [0], [0], [0, 0, 1, 0], [], []>} : vector<8x256xf32>, vector<128x256xf32>, vector<8x128xf32> -> vector<8x128xf32>
    %cst_8 = arith.constant dense<0.000000e+00> : vector<8x128xf32>
    %6 = tpu.matmul %5, %1, %cst_8 {dimension_numbers = #tpu.dot_dimension_numbers<[1], [1], [0], [0], [0, 0, 1, 0], [], []>} : vector<8x128xf32>, vector<128x128xf32>, vector<8x128xf32> -> vector<8x128xf32>
    %7 = vector.broadcast %2 : vector<1x128xf32> to vector<8x128xf32>
    %8 = arith.addf %6, %7 : vector<8x128xf32>
    %c0_9 = arith.constant 0 : index
    %c0_10 = arith.constant 0 : index
    %c0_11 = arith.constant 0 : index
    %9 = vector.load %arg5[%c0_9, %c0_10, %c0_11] : memref<1x8x128xf32, #tpu.memory_space<vmem>>, vector<1x8x128xf32>
    %10 = vector.shape_cast %9 : vector<1x8x128xf32> to vector<8x128xf32>
    %11 = vector.shape_cast %8 : vector<8x128xf32> to vector<1x8x128xf32>
    tpu.vector_store %arg5[%c0_9, %c0_10, %c0_11], %11 {strides = array<i32>} : memref<1x8x128xf32, #tpu.memory_space<vmem>>, vector<1x8x128xf32>,
    return
  }
  func.func @transform_0(%arg0: i32) -> (i32, i32, i32) {
    %c0_i32 = arith.constant 0 : i32
    %c0_i32_0 = arith.constant 0 : i32
    %c0_i32_1 = arith.constant 0 : i32
    return %arg0, %c0_i32, %c0_i32_0 : i32, i32, i32
  }
  func.func @transform_1(%arg0: i32) -> (i32, i32) {
    %c0_i32 = arith.constant 0 : i32
    %c0_i32_0 = arith.constant 0 : i32
    %c0_i32_1 = arith.constant 0 : i32
    return %c0_i32, %c0_i32_0 : i32, i32
  }
  func.func @transform_2(%arg0: i32) -> (i32, i32) {
    %c0_i32 = arith.constant 0 : i32
    %c0_i32_0 = arith.constant 0 : i32
    %c0_i32_1 = arith.constant 0 : i32
    return %c0_i32, %c0_i32_0 : i32, i32
  }
  func.func @transform_3(%arg0: i32) -> (i32, i32) {
    %c0_i32 = arith.constant 0 : i32
    %c0_i32_0 = arith.constant 0 : i32
    %c0_i32_1 = arith.constant 0 : i32
    return %c0_i32, %c0_i32_0 : i32, i32
  }
  func.func @transform_4(%arg0: i32) -> (i32, i32, i32) {
    %c0_i32 = arith.constant 0 : i32
    %c0_i32_0 = arith.constant 0 : i32
    %c0_i32_1 = arith.constant 0 : i32
    return %arg0, %c0_i32, %c0_i32_0 : i32, i32, i32
  }
}

</mosaic_0001>

<bundles_post_ra>
// kernel: tpu_custom_call.1
= control target key start
LH: loop header
LB: loop body
LE: loop exit
PB: predicated region body
PF: predicated region fallthrough
CT: control target
= control target key end

     0   :  { %9 = vsyncpa [#allocation3], 0  ;;  %s1300_s0 = inlined_call_operand.hbm [shape: f32[2,128,256], index: 0, kind: input, shape index: {}]   ;;  %s1301_s1 = inlined_call_operand.hbm [shape: f32[8,256], index: 1, kind: input, shape index: {}]   ;;  %s1302_s2 = inlined_call_operand.hbm [shape: f32[128,128], index: 2, kind: input, shape index: {}]   ;;  %s1303_s3 = inlined_call_operand.hbm [shape: f32[1,128], index: 3, kind: input, shape index: {}]   ;;  %s1304_s4 = inlined_call_operand.hbm [shape: f32[2,8,128], index: 4, kind: output, shape index: {}]  }
   0x1   :  { %11 = vsyncpa [#allocation3 + $0x1], 0 }
   0x2   :  { %12 = vsyncpa [#allocation6], 0 }
   0x3   :  { %13 = vsyncpa [#allocation9], 0 }
   0x4   :  { %14 = vsyncpa [#allocation4], 0 }
   0x5   :  { %16 = vsyncpa [#allocation4 + $0x1], 0  ;;  %s1007_s15 = smov 0   ;;  %s1009_s16 = smov 0  }
   0x6   :  { %s1011_s17 = smov 0   ;;  %s1013_s18 = smov 0  }
   0x7 LB: > { %s1028_s19 = sadd.s32 4294967295, %s968_s18   ;;  %s567_s20 = sadd.s32 4294967294, %s968_s18   ;;  %s968_s18 = sphi %s1013_s18, %s1327_s18   ;;  %s964_s17 = sphi %s1011_s17, %s1326_s17   ;;  %s960_s16 = sphi %s1009_s16, %s1325_s16   ;;  %s956_s15 = sphi %s1007_s15, %s1324_s15  }
   0x8   : > { %p42_p0 = scmp.ne.s32.totalorder %s960_s16, %s956_s15  ;;  %p1305_p1 = scmp.eq.s32.totalorder %s1028_s19, 0 }
   0x9   : > { %p135_p3 = scmp.eq.s32.totalorder %s567_s20, 1  ;;  %p568_p5 = scmp.ge.s32.totalorder %s968_s18, 1 }
   0xa   : > { %p1037_p4 = por %p1305_p1, %p42_p0  ;;  %p142_p7 = scmp.lt.s32.totalorder %s968_s18, 3 }
   0xb   : > { %p1042_p6 = por %p135_p3, %p42_p0  ;;  %s970_s24 = smov [#allocation5]  }
   0xc   : > { %s1308_s21 = scalar_select %p1037_p4, 1, 0 }
   0xd   : > { %s1309_s22 = scalar_select %p1042_p6, 1, 0 }
   0xe   : > { %p1047_p8 = pnand %p568_p5, %p142_p7  ;;  %s155_s25 = sshll.u32 %s970_s24, 4  ;;  %s156_s25 = int_to_ptr.vmem [resolvable:$true] %s155_s25 }
   0xf   : > { %s971_s26 = smov [#allocation7]   ;;  %s972_s29 = smov [#allocation8]  }
  0x10   : > { %s1310_s23 = scalar_select %p1047_p8, 1, 0 }
  0x11   : > { %p712_p10 = pneg %p1047_p8  ;;  %s165_s27 = sshll.u32 %s971_s26, 4  ;;  %s1060_s27 = int_to_ptr.vmem [resolvable:$true] %s165_s27 }
  0x12   : > { %s1062_s30 = sshll.u32 %s972_s29, 4  ;;  %s780_s7 = scalar_lea.hbm %s1301_s1, 256  ;;  %s180_s30 = int_to_ptr.vmem [resolvable:$true] %s1062_s30 }
  0x13   : > { %p1056_p11 = pnand %p712_p10, %p1305_p1  ;;  %p781_p12 = scmp.ne.s32.totalorder %s1301_s1, %s780_s7 }
  0x14   : > { %p787_p5 = scmp.lt.u32.totalorder %s780_s7, %s1301_s1 }
  0x15   : > { %p1072_p13 = pneg %p1056_p11 }
  0x17   : > { %p783_p0 = pnand %p1072_p13, %p781_p12 }
  0x19   : > { %p784_p3 = pneg %p783_p0 }
  0x1b   : > { %p789_p7 = pnand %p787_p5, %p784_p3 }
  0x1d   : > { %792 = shalt.err (!%p789_p7)
}
  0x1e   : > { %s793_s13 = scalar_lea.vmem %s156_s25, 256  ;;  %p801_p2 = scmp.lt.s32.totalorder %s156_s25, %s156_s25 }
  0x1f   : > { %p794_p10 = scmp.ne.s32.totalorder %s156_s25, %s793_s13  ;;  %p802_p6 = scmp.lt.s32.totalorder %s793_s13, %s793_s13 }
  0x21   : > { %p796_p9 = pnand %p794_p10, %p1072_p13  ;;  %p803_p4 = por %p802_p6, %p801_p2 }
  0x23   : > { %p797_p1 = pneg %p796_p9 }
  0x25   : > { %p804_p8 = pnand %p803_p4, %p797_p1 }
  0x27   : > { %807 = shalt.err (!%p804_p8)
}
  0x28   : > { %715 = dma.hbm_to_vmem [thread:$0]  (!%p1056_p11), %s1301_s1, 256, %s156_s25, [#allocation6]  }
  0x29   : > { %s808_s29 = scalar_lea.hbm %s1302_s2, 2048 }
  0x2a   : > { %p809_p9 = scmp.ne.s32.totalorder %s1302_s2, %s808_s29  ;;  %p815_p1 = scmp.lt.u32.totalorder %s808_s29, %s1302_s2 }
  0x2c   : > { %p811_p12 = pnand %p809_p9, %p1072_p13 }
  0x2e   : > { %p812_p2 = pneg %p811_p12 }
  0x30   : > { %p817_p4 = pnand %p815_p1, %p812_p2 }
  0x32   : > { %820 = shalt.err (!%p817_p4)
}
  0x33   : > { %s821_s25 = scalar_lea.vmem %s1060_s27, 2048  ;;  %p829_p3 = scmp.lt.s32.totalorder %s1060_s27, %s1060_s27 }
  0x34   : > { %p822_p6 = scmp.ne.s32.totalorder %s1060_s27, %s821_s25  ;;  %p830_p5 = scmp.lt.s32.totalorder %s821_s25, %s821_s25 }
  0x36   : > { %p824_p8 = pnand %p822_p6, %p1072_p13  ;;  %p831_p7 = por %p830_p5, %p829_p3 }
  0x38   : > { %p825_p0 = pneg %p824_p8 }
  0x3a   : > { %p832_p10 = pnand %p831_p7, %p825_p0 }
  0x3c   : > { %835 = shalt.err (!%p832_p10)
}
  0x3d   : > { %s973_s9 = smov 128   ;;  %s974_s11 = smov 8  }
  0x3e   : > { %718 = dma.hbm_to_vmem [thread:$0]  (!%p1056_p11), %s1302_s2, 2048, %s1060_s27, [#allocation6], %s973_s9, %s973_s9, %s974_s11  }
  0x3f   : > { %s836_s24 = scalar_lea.hbm %s1303_s3, 16 }
  0x40   : > { %p837_p9 = scmp.ne.s32.totalorder %s1303_s3, %s836_s24  ;;  %p843_p1 = scmp.lt.u32.totalorder %s836_s24, %s1303_s3 }
  0x42   : > { %p839_p12 = pnand %p837_p9, %p1072_p13 }
  0x44   : > { %p840_p2 = pneg %p839_p12 }
  0x46   : > { %p845_p4 = pnand %p843_p1, %p840_p2 }
  0x48   : > { %848 = shalt.err (!%p845_p4)
}
  0x49   : > { %s849_s7 = scalar_lea.vmem %s180_s30, 16  ;;  %s856_s27 = scalar_lea.vmem %s180_s30, 32 }
  0x4a   : > { %p850_p6 = scmp.ne.s32.totalorder %s180_s30, %s849_s7  ;;  %p857_p3 = scmp.lt.s32.totalorder %s180_s30, %s180_s30 }
  0x4b   : > { %p858_p5 = scmp.lt.s32.totalorder %s856_s27, %s849_s7 }
  0x4c   : > { %p852_p8 = pnand %p850_p6, %p1072_p13 }
  0x4d   : > { %p859_p7 = por %p858_p5, %p857_p3 }
  0x4e   : > { %p853_p0 = pneg %p852_p8 }
  0x50   : > { %p860_p10 = pnand %p859_p7, %p853_p0 }
  0x52   : > { %863 = shalt.err (!%p860_p10)
}
  0x53   : > { %721 = dma.hbm_to_vmem [thread:$0]  (!%p1056_p11), %s1303_s3, 16, %s180_s30, [#allocation9]  }
  0x54   : > { %s1131_s10 = sadd.s32 1, %s968_s18   ;;  %s29_s28 = sadd.s32 1, %s964_s17 }
  0x55   : > { %s26_s9 = ssub.s32 %s968_s18, %s1131_s10  ;;  %p36_p9 = scmp.ne.s32.totalorder %s964_s17, %s960_s16 }
  0x56   : > { %p27_p13 = scmp.eq.s32.totalorder %s26_s9, 0  ;;  %p37_p12 = scmp.eq.s32.totalorder %s968_s18, 0 }
  0x57   : > { %p733_p2 = scmp.lt.s32.totalorder %s968_s18, 2  ;;  %p1313_p4 = scmp.eq.s32.totalorder %s1028_s19, 1 }
  0x58   : > { %s1141_s11 = scalar_select %p27_p13, %s964_s17, %s29_s28  }
  0x59   : > { %p38_p1 = por %p37_p12, %p36_p9  ;;  %p1145_p6 = por %p1313_p4, %p36_p9 }
  0x5a   : > { %s190_s13 = sand.u32 1, %s964_s17   ;;  %s587_s14 = sshll.u32 %s968_s18, 12 }
  0x5b   : > { %s573_s30 = sshll.u32 %s190_s13, 8  ;;  %s1154_s26 = scalar_lea.hbm %s1300_s0, %s587_s14 }
  0x5c   : > { %s194_s29 = scalar_lea.vmem [#allocation2], %s573_s30  ;;  %p1156_p11 = pnand %p733_p2, %p38_p1 }
  0x5d   : > { %s201_s5 = sshll.u32 %s194_s29, 4  ;;  %s1162_s7 = scalar_lea.sflag [#allocation3], %s190_s13  ;;  %s1160_s5 = int_to_ptr.vmem [resolvable:$true] %s201_s5 }
  0x5e   : > { %s864_s27 = scalar_lea.hbm %s1154_s26, 4096  ;;  %p866_p0 = pneg %p1156_p11 }
  0x5f   : > { %p865_p8 = scmp.ne.s32.totalorder %s1154_s26, %s864_s27  ;;  %s869_s9 = scalar_lea.hbm %s1300_s0, 8192 }
  0x60   : > { %p870_p7 = scmp.lt.u32.totalorder %s1154_s26, %s1300_s0  ;;  %p871_p10 = scmp.lt.u32.totalorder %s869_s9, %s864_s27 }
  0x61   : > { %p867_p3 = pnand %p866_p0, %p865_p8  ;;  %p873_p9 = scmp.lt.u32.totalorder %s864_s27, %s1154_s26 }
  0x62   : > { %p872_p13 = por %p871_p10, %p870_p7 }
  0x63   : > { %p868_p5 = pneg %p867_p3 }
  0x64   : > { %p874_p12 = por %p873_p9, %p872_p13 }
  0x66   : > { %p875_p2 = pnand %p874_p12, %p868_p5 }
  0x68   : > { %878 = shalt.err (!%p875_p2)
}
  0x69   : > { %s879_s13 = scalar_lea.vmem %s1160_s5, 4096  ;;  %s975_s30 = smov [#allocation2]  }
  0x6a   : > { %p880_p1 = scmp.ne.s32.totalorder %s1160_s5, %s879_s13  ;;  %s884_s20 = sshll.u32 %s975_s30, 4  ;;  %s885_s20 = int_to_ptr.vmem [resolvable:$false] %s884_s20 }
  0x6b   : > { %s886_s24 = scalar_lea.vmem %s885_s20, 8192  ;;  %p887_p3 = scmp.lt.s32.totalorder %s1160_s5, %s885_s20 }
  0x6c   : > { %p882_p4 = pnand %p880_p1, %p866_p0  ;;  %p888_p7 = scmp.lt.s32.totalorder %s886_s24, %s879_s13 }
  0x6e   : > { %p883_p8 = pneg %p882_p4  ;;  %p889_p10 = por %p888_p7, %p887_p3 }
  0x70   : > { %p890_p13 = pnand %p889_p10, %p883_p8 }
  0x72   : > { %893 = shalt.err (!%p890_p13)
}
  0x73   : > { %s976_s29 = smov 256   ;;  %s977_s27 = smov 16  }
  0x74   : > { %725 = dma.hbm_to_vmem [thread:$0]  (!%p1156_p11), %s1154_s26, 4096, %s1160_s5, %s1162_s7, %s976_s29, %s976_s29, %s977_s27  }
  0x75   : > { %p1316_p0 = scmp.ne.s32.totalorder %s1310_s23, 0 }
  0x76   : > { %s1193_s8 = sand.u32 (!%p1316_p0), 1, %s960_s16   ;;  %p1317_p5 = scmp.ne.s32.totalorder (!%p1316_p0), %s1308_s21, 0 }
  0x77   : > { %213 = sbr.rel (%p1316_p0) target bundleno = 641 (0x281), region = 36  ;;  %s577_s25 = sshll.u32 (!%p1316_p0), %s1193_s8, 8 }
  0x78   : > { %s216_s9 = scalar_lea.sflag (!%p1316_p0), [#allocation3], %s1193_s8  ;;  %s1197_s28 = scalar_lea.vmem (!%p1316_p0), [#allocation2], %s577_s25 }
  0x7e   : > { %939 = dma.done.wait (%p1317_p5), %s216_s9, 4096  }
  0x7f   : > { %941 = vsyncadd (%p1317_p5), %s216_s9, 4294963200  ;;  %p1318_p11 = scmp.eq.s32.totalorder %s1028_s19, 0 }
  0x81   : > { %943 = dma.done.wait (%p1318_p11), [#allocation6], 2304   ;;  %p1319_p9 = pmov %p1318_p11 }
  0x83   : > { %945 = vsyncadd (%p1319_p9), [#allocation6], 4294964992  ;;  %p1320_p12 = pmov %p1319_p9 }
  0x84   : > { %p1321_p2 = pmov %p1319_p9 }
  0x85   : > { %947 = dma.done.wait (%p1320_p12), [#allocation9], 16  }
  0x86   : > { %949 = vsyncadd (%p1321_p2), [#allocation9], 4294967280  ;;  %v978_v0 = vmov 0.0|0.0   ;;  %v276_v1 = vld [vmem:[%s1197_s28 + $0x8] sm:$0xff]  ;;  %v278_v2 = vld [vmem:[%s1197_s28 + $0x18] sm:$0xff]  ;;  %vm979_vm0 = vmmov 0  }
  0x87   : > { %672 = vmatprep.subr.bf16.mxu1 %v978_v0  ;;  %v275_v3 = vld [vmem:[%s1197_s28] sm:$0xff]  ;;  %v640_v4 = vpack.c.bf16 %v278_v2, %v276_v1  ;;  %v277_v5 = vld [vmem:[%s1197_s28 + $0x10] sm:$0xff]  ;;  %v280_v6 = vld [vmem:[%s1197_s28 + $0x28] sm:$0xff]  ;;  %s581_s21 = sshll.u32 %s1193_s8, 3  ;;  %s584_s23 = sshll.u32 %s1028_s19, 7 }
  0x88   : > { %v282_v7 = vld [vmem:[%s1197_s28 + $0x38] sm:$0xff]  ;;  %v642_v8 = vpack.c.bf16 %v277_v5, %v275_v3  ;;  %v279_v10 = vld [vmem:[%s1197_s28 + $0x20] sm:$0xff]  ;;  %v281_v11 = vld [vmem:[%s1197_s28 + $0x30] sm:$0xff]  ;;  %s255_s26 = scalar_lea.vmem [#allocation10], %s581_s21  ;;  %s1256_s14 = scalar_lea.hbm %s1304_s4, %s584_s23 }
  0x89   : > { %v644_v9 = vpack.c.bf16 %v282_v7, %v280_v6  ;;  %641 = vmatprep.subr.bf16.mxu0 %v640_v4  ;;  %v284_v12 = vld [vmem:[%s1197_s28 + $0x48] sm:$0xff]  ;;  %v286_v13 = vld [vmem:[%s1197_s28 + $0x58] sm:$0xff]  ;;  %v646_v14 = vpack.c.bf16 %v281_v11, %v279_v10  ;;  %v258_v17 = vld [vmem:[#allocation7] sm:$0xff]  ;;  %s468_s5 = sshll.u32 %s255_s26, 4  ;;  %s455_s13 = scalar_lea.sflag [#allocation4], %s1193_s8  ;;  %s1258_s5 = int_to_ptr.vmem [resolvable:$true] %s468_s5 }
  0x8a   : > { %643 = vmatpush1.bf16.xpose.msra.mxu0 %v642_v8  ;;  %v648_v15 = vpack.c.bf16 %v286_v13, %v284_v12  ;;  %v257_v16 = vld [vmem:[#allocation5 + $0x8] sm:$0xff]  ;;  %v259_v18 = vld [vmem:[#allocation7 + $0x8] sm:$0xff]  ;;  %v283_v20 = vld [vmem:[%s1197_s28 + $0x40] sm:$0xff]  ;;  %v980_v12 = vmov 0.0   ;;  %s894_s30 = scalar_lea.vmem %s1258_s5, 128  ;;  %s981_s19 = smov [#allocation10]  }
  0x8b   : > { %645 = vmatprep.subr.bf16.mxu0 %v644_v9  ;;  %371 = vmatprep.mubr.f32.mxu0 %v257_v16  ;;  %v673_v19 = vpack.c.bf16 %v259_v18, %v258_v17  ;;  %v285_v21 = vld [vmem:[%s1197_s28 + $0x50] sm:$0xff]  ;;  %v288_v22 = vld [vmem:[%s1197_s28 + $0x68] sm:$0xff]  ;;  %v290_v23 = vld [vmem:[%s1197_s28 + $0x78] sm:$0xff]  ;;  %p895_p1 = scmp.ne.s32.totalorder %s1258_s5, %s894_s30  ;;  %s898_s20 = sshll.u32 %s981_s19, 4  ;;  %s899_s20 = int_to_ptr.vmem [resolvable:$false] %s898_s20 }
  0x8c   : > { %v260_v24 = vld [vmem:[#allocation7 + $0x10] sm:$0xff]  ;;  %v261_v25 = vld [vmem:[#allocation7 + $0x18] sm:$0xff]  ;;  %v650_v26 = vpack.c.bf16 %v285_v21, %v283_v20  ;;  %v652_v27 = vpack.c.bf16 %v290_v23, %v288_v22  ;;  %v289_v30 = vld [vmem:[%s1197_s28 + $0x70] sm:$0xff]  ;;  %637 = vmatprep.mubr.msk.f32.mxu1 %vm979_vm0, %v980_v12  ;;  %s900_s24 = scalar_lea.vmem %s899_s20, 256  ;;  %p901_p3 = scmp.lt.s32.totalorder %s1258_s5, %s899_s20 }
  0x8d   : > { %674 = vmatpush3.bf16.xpose.msra.mxu1 %v673_v19  ;;  %v676_v28 = vpack.c.bf16 %v261_v25, %v260_v24  ;;  %v287_v29 = vld [vmem:[%s1197_s28 + $0x60] sm:$0xff]  ;;  %v292_v31 = vld [vmem:[%s1197_s28 + $0x88] sm:$0xff]  ;;  %v294_v32 = vld [vmem:[%s1197_s28 + $0x98] sm:$0xff]  ;;  %p896_p4 = pnand %p895_p1, %p1145_p6  ;;  %p902_p7 = scmp.lt.s32.totalorder %s900_s24, %s894_s30 }
  0x8e   : > { %675 = vmatprep.subr.bf16.mxu1 %v978_v0  ;;  %v262_v33 = vld [vmem:[#allocation7 + $0x20] sm:$0xff]  ;;  %v263_v34 = vld [vmem:[#allocation7 + $0x28] sm:$0xff]  ;;  %v654_v35 = vpack.c.bf16 %v289_v30, %v287_v29  ;;  %v656_v36 = vpack.c.bf16 %v294_v32, %v292_v31  ;;  %v291_v38 = vld [vmem:[%s1197_s28 + $0x80] sm:$0xff] }
  0x8f   : > { %v679_v37 = vpack.c.bf16 %v263_v34, %v262_v33  ;;  %v293_v39 = vld [vmem:[%s1197_s28 + $0x90] sm:$0xff]  ;;  %v296_v40 = vld [vmem:[%s1197_s28 + $0xa8] sm:$0xff]  ;;  %v298_v41 = vld [vmem:[%s1197_s28 + $0xb8] sm:$0xff]  ;;  %p897_p8 = pneg %p896_p4  ;;  %p903_p10 = por %p902_p7, %p901_p3 }
  0x90   : > { %v264_v42 = vld [vmem:[#allocation7 + $0x30] sm:$0xff]  ;;  %v265_v43 = vld [vmem:[#allocation7 + $0x38] sm:$0xff]  ;;  %v658_v44 = vpack.c.bf16 %v293_v39, %v291_v38  ;;  %v660_v45 = vpack.c.bf16 %v298_v41, %v296_v40  ;;  %v297_v48 = vld [vmem:[%s1197_s28 + $0xb0] sm:$0xff] }
  0x91   : > { %v682_v46 = vpack.c.bf16 %v265_v43, %v264_v42  ;;  %v295_v47 = vld [vmem:[%s1197_s28 + $0xa0] sm:$0xff]  ;;  %v300_v49 = vld [vmem:[%s1197_s28 + $0xc8] sm:$0xff]  ;;  %v302_v50 = vld [vmem:[%s1197_s28 + $0xd8] sm:$0xff]  ;;  %p904_p13 = pnand %p903_p10, %p897_p8 }
  0x92   : > { %647 = vmatpush1.bf16.xpose.msra.mxu0 %v646_v14  ;;  %v266_v51 = vld [vmem:[#allocation7 + $0x40] sm:$0xff]  ;;  %v267_v52 = vld [vmem:[#allocation7 + $0x48] sm:$0xff]  ;;  %v662_v53 = vpack.c.bf16 %v297_v48, %v295_v47  ;;  %v664_v54 = vpack.c.bf16 %v302_v50, %v300_v49  ;;  %v299_v56 = vld [vmem:[%s1197_s28 + $0xc0] sm:$0xff] }
  0x93   : > { %649 = vmatprep.subr.bf16.mxu0 %v648_v15  ;;  %v685_v55 = vpack.c.bf16 %v267_v52, %v266_v51  ;;  %v301_v57 = vld [vmem:[%s1197_s28 + $0xd0] sm:$0xff]  ;;  %v304_v58 = vld [vmem:[%s1197_s28 + $0xe8] sm:$0xff]  ;;  %v306_v59 = vld [vmem:[%s1197_s28 + $0xf8] sm:$0xff] }
  0x94   : > { %v268_v60 = vld [vmem:[#allocation7 + $0x50] sm:$0xff]  ;;  %v269_v61 = vld [vmem:[#allocation7 + $0x58] sm:$0xff]  ;;  %v666_v62 = vpack.c.bf16 %v301_v57, %v299_v56  ;;  %v668_v63 = vpack.c.bf16 %v306_v59, %v304_v58  ;;  %v305_v3 = vld [vmem:[%s1197_s28 + $0xf0] sm:$0xff] }
  0x95   : > { %677 = vmatpush3.bf16.xpose.msra.mxu1 %v676_v28  ;;  %v688_v1 = vpack.c.bf16 %v269_v61, %v268_v60  ;;  %v303_v2 = vld [vmem:[%s1197_s28 + $0xe0] sm:$0xff]  ;;  %v270_v4 = vld [vmem:[#allocation7 + $0x60] sm:$0xff]  ;;  %v271_v5 = vld [vmem:[#allocation7 + $0x68] sm:$0xff] }
  0x96   : > { %678 = vmatprep.subr.bf16.mxu1 %v978_v0  ;;  %v670_v6 = vpack.c.bf16 %v305_v3, %v303_v2  ;;  %v691_v7 = vpack.c.bf16 %v271_v5, %v270_v4  ;;  %v272_v8 = vld [vmem:[#allocation7 + $0x70] sm:$0xff]  ;;  %v273_v9 = vld [vmem:[#allocation7 + $0x78] sm:$0xff]  ;;  %v582_v15 = vld [vmem:[#allocation8] ss:$0 sm:$0xff] }
  0x97   : > { %v256_v10 = vld [vmem:[#allocation5] sm:$0xff]  ;;  %v694_v11 = vpack.c.bf16 %v273_v9, %v272_v8 }
  0x9a   : > { %651 = vmatpush1.bf16.xpose.msra.mxu0 %v650_v26 }
  0x9b   : > { %653 = vmatprep.subr.bf16.mxu0 %v652_v27 }
  0x9d   : > { %680 = vmatpush3.bf16.xpose.msra.mxu1 %v679_v37 }
  0x9e   : > { %681 = vmatprep.subr.bf16.mxu1 %v978_v0 }
  0xa2   : > { %655 = vmatpush1.bf16.xpose.msra.mxu0 %v654_v35 }
  0xa3   : > { %657 = vmatprep.subr.bf16.mxu0 %v656_v36 }
  0xa5   : > { %683 = vmatpush3.bf16.xpose.msra.mxu1 %v682_v46 }
  0xa6   : > { %684 = vmatprep.subr.bf16.mxu1 %v978_v0 }
  0xaa   : > { %659 = vmatpush1.bf16.xpose.msra.mxu0 %v658_v44 }
  0xab   : > { %661 = vmatprep.subr.bf16.mxu0 %v660_v45 }
  0xad   : > { %686 = vmatpush3.bf16.xpose.msra.mxu1 %v685_v55 }
  0xae   : > { %687 = vmatprep.subr.bf16.mxu1 %v978_v0 }
  0xb2   : > { %663 = vmatpush1.bf16.xpose.msra.mxu0 %v662_v53 }
  0xb3   : > { %665 = vmatprep.subr.bf16.mxu0 %v664_v54 }
  0xb5   : > { %689 = vmatpush3.bf16.xpose.msra.mxu1 %v688_v1 }
  0xb6   : > { %690 = vmatprep.subr.bf16.mxu1 %v978_v0 }
  0xba   : > { %667 = vmatpush1.bf16.xpose.msra.mxu0 %v666_v62 }
  0xbb   : > { %669 = vmatprep.subr.bf16.mxu0 %v668_v63 }
  0xbd   : > { %692 = vmatpush3.bf16.xpose.msra.mxu1 %v691_v7 }
  0xbe   : > { %693 = vmatprep.subr.bf16.mxu1 %v978_v0 }
  0xc2   : > { %671 = vmatpush1.bf16.xpose.msra.mxu0 %v670_v6 }
  0xc5   : > { %695 = vmatpush3.bf16.xpose.msra.mxu1 %v694_v11 }
  0xc9   : > { %372 = vmatmul.mubr.f32.vlgmr.msra.gmra.mrb[0].mxu0 %v256_v10 }
 0x19c   : > { %v373_v13 = vpop.f32.mrb[0].mxu0 }
 0x19d   : > { %v375_v14 = vpop.f32.mrb[1].mxu0  ;;  %638 = vmatmul.mubr.f32.vlgmr.msra.gmra.mrb[0].mxu1 %v373_v13 }
 0x270   : > { %v449_v0 = vpop.f32.mrb[0].mxu1 }
 0x271   : > { %v450_v16 = vadd.f32 %v582_v15, %v449_v0  ;;  %v639_v17 = vpop.f32.mrb[1].mxu1 }
 0x273   : > { %453 = vst [vmem:[%s255_s26] sm:$0xff] %v450_v16 }
 0x274   : > { %907 = shalt.err (!%p904_p13)
}
 0x275   : > { %s908_s29 = scalar_lea.hbm %s1256_s14, 128  ;;  %s912_s25 = scalar_lea.hbm %s1304_s4, 256 }
 0x276   : > { %p909_p0 = scmp.ne.s32.totalorder %s1256_s14, %s908_s29  ;;  %p913_p9 = scmp.lt.u32.totalorder %s1256_s14, %s1304_s4 }
 0x277   : > { %p914_p12 = scmp.lt.u32.totalorder %s912_s25, %s908_s29  ;;  %p916_p1 = scmp.lt.u32.totalorder %s908_s29, %s1256_s14 }
 0x278   : > { %p910_p5 = pnand %p909_p0, %p1145_p6 }
 0x279   : > { %p915_p2 = por %p914_p12, %p913_p9 }
 0x27a   : > { %p911_p11 = pneg %p910_p5 }
 0x27b   : > { %p917_p4 = por %p916_p1, %p915_p2 }
 0x27d   : > { %p918_p8 = pnand %p917_p4, %p911_p11 }
 0x27f   : > { %921 = shalt.err (!%p918_p8)
}
 0x280   : > { %710 = dma.vmem_to_hbm [thread:$0]  (%p1145_p6), %s1258_s5, 128, %s1256_s14, %s455_s13  }
 0x281 PF: > { %s480_s21 = sand.u32 1, %s956_s15   ;;  %p1322_p3 = scmp.ne.s32.totalorder %s1309_s22, 0 }
 0x282   : > { %p1323_p7 = scmp.ge.s32.totalorder %s968_s18, 2  ;;  %s481_s23 = scalar_lea.sflag [#allocation4], %s480_s21 }
 0x284   : > { %p727_p10 = pnand %p1323_p7, %p1322_p3 }
 0x286   : > { %951 = dma.done.wait (!%p727_p10), %s481_s23, 128  }
 0x287   : > { %953 = vsyncadd (!%p727_p10), %s481_s23, 4294967168  ;;  %p19_p13 = scmp.ge.s32.totalorder %s1131_s10, 4   ;;  %s1324_s15 = smov %s960_s16 }
 0x288   : > { %s1325_s16 = smov %s964_s17  ;;  %s1326_s17 = smov %s1141_s11 }
 0x289   : > { %s1327_s18 = smov %s1131_s10  ;;  %21 = sbr.rel (!%p19_p13) target bundleno = 7 (0x7), region = 93 }
 0x290   :  { %486 = vsyncpa [#allocation3], 1 }
 0x291   :  { %488 = vsyncpa [#allocation3 + $0x1], 1 }
 0x292   :  { %489 = vsyncpa [#allocation6], 1 }
 0x293   :  { %490 = vsyncpa [#allocation9], 1 }
 0x294   :  { %491 = vsyncpa [#allocation4], 1 }
 0x295   :  { %493 = vsyncpa [#allocation4 + $0x1], 1 }

</bundles_post_ra>
